<compile_context>
chip_gen: v6e
topology: v6e:2x2x1
jax: 0.10.0
libtpu: 0.0.40
codegen_flags: <defaults>
</compile_context>

<pallas_src>
import functools

import jax
import jax.numpy as jnp
from jax import lax
from jax.experimental import pallas as pl
from jax.experimental.pallas import tpu as pltpu


def _round_up(x, m):
    return ((x + m - 1) // m) * m


def _conv3d_kernel(p_ref, w_ref, b_ref, o_ref):
    """One lane-dense MXU matmul per output tile: o = p @ w + b.

    p_ref: (tm, Kp)     bf16   im2col patch tile (K = 27*Cin, zero-padded)
    w_ref: (Kp, Coutp)  bf16   folded weights, VMEM-resident (constant index map)
    b_ref: (1, Coutp)   f32    bias, VMEM-resident
    o_ref: (tm, Coutp)  f32    lane-dense output tile
    """
    acc = jnp.dot(p_ref[...], w_ref[...], preferred_element_type=jnp.float32)
    o_ref[...] = (acc + b_ref[...]).astype(o_ref.dtype)


def conv3d_pallas(x, weight, bias, stride, padding, tm=512,
                  compute_dtype=jnp.bfloat16):
    """3D conv, kernel 3x3x3.  x: (N,Cin,D,H,W)  weight: (Cout,Cin,3,3,3)."""
    N, Cin, D, H, W = x.shape
    Cout = weight.shape[0]
    s, p = int(stride), int(padding)
    Do = (D + 2 * p - 3) // s + 1
    Ho = (H + 2 * p - 3) // s + 1
    Wo = (W + 2 * p - 3) // s + 1
    out_dtype = x.dtype

    K = 27 * Cin
    Kp = _round_up(K, 128)        # lane-dense contraction dim (MXU K)
    Coutp = _round_up(Cout, 128)  # lane-dense output dim (unmasked stores)
    M = N * Do * Ho * Wo
    Mp = _round_up(M, tm)

    # ---- glue (pure layout, fused under jit): NCDHW -> NDHWC, pad, im2col ----
    xc = jnp.transpose(x, (0, 2, 3, 4, 1)).astype(compute_dtype)
    xp = jnp.pad(xc, ((0, 0), (p, p), (p, p), (p, p), (0, 0)))

    pats = []
    for kd in range(3):
        for kh in range(3):
            for kw in range(3):
                pats.append(
                    xp[:, kd:kd + s * Do:s, kh:kh + s * Ho:s, kw:kw + s * Wo:s, :]
                )
    # (N,Do,Ho,Wo,27,Cin) -> (M, 27*Cin): tap-major, channel-minor K ordering.
    patches = jnp.stack(pats, axis=4).reshape(M, K)
    patches = jnp.pad(patches, ((0, Mp - M), (0, Kp - K)))

    # weight (Cout,Cin,3,3,3) -> (kd,kh,kw,Cin,Cout) -> (27*Cin, Cout): matches
    # the patch K ordering exactly; then zero-pad K and Cout.
    w_mat = jnp.transpose(weight, (2, 3, 4, 1, 0)).reshape(K, Cout)
    w_mat = jnp.pad(w_mat.astype(compute_dtype),
                    ((0, Kp - K), (0, Coutp - Cout)))
    b_mat = jnp.pad(bias.astype(jnp.float32).reshape(1, Cout),
                    ((0, 0), (0, Coutp - Cout)))

    out_flat = pl.pallas_call(
        _conv3d_kernel,
        out_shape=jax.ShapeDtypeStruct((Mp, Coutp), out_dtype),
        grid_spec=pltpu.PrefetchScalarGridSpec(
            num_scalar_prefetch=0,
            grid=(Mp // tm,),
            in_specs=[
                pl.BlockSpec((tm, Kp), lambda i: (i, 0)),       # patches tile
                pl.BlockSpec((Kp, Coutp), lambda i: (0, 0)),    # weights (resident)
                pl.BlockSpec((1, Coutp), lambda i: (0, 0)),     # bias (resident)
            ],
            out_specs=pl.BlockSpec((tm, Coutp), lambda i: (i, 0)),
        ),
        compiler_params=pltpu.CompilerParams(
            dimension_semantics=("parallel",),
            vmem_limit_bytes=32 * 1024 * 1024,
        ),
    )(patches, w_mat, b_mat)

    out = out_flat[:M, :Cout].reshape(N, Do, Ho, Wo, Cout)
    return jnp.transpose(out, (0, 4, 1, 2, 3))  # back to NCDHW


class Conv3dsepPallas:
    """Mirror of the PyTorch Conv3dsep module (deterministic init)."""

    def __init__(self, in_f, out_f, stride, padding, key):
        self.stride = int(stride)
        self.padding = int(padding)
        k_w, k_b = jax.random.split(key)
        fan_in = in_f * 3 * 3 * 3
        bound = 1.0 / jnp.sqrt(fan_in)
        # PyTorch-default-style uniform init (deterministic, not a checkpoint)
        self.weight = jax.random.uniform(
            k_w, (out_f, in_f, 3, 3, 3), jnp.float32, -bound, bound)
        self.bias = jax.random.uniform(
            k_b, (out_f,), jnp.float32, -bound, bound)

    def __call__(self, x):
        return conv3d_pallas(x, self.weight, self.bias,
                             self.stride, self.padding)


if __name__ == "__main__":
    key = jax.random.PRNGKey(0)
    k_x, k_p = jax.random.split(key)

    # small shapes consistent with the module: N=2, Cin=4, Cout=8, D=H=W=16
    in_f, out_f, stride, padding = 4, 8, 1, 1
    x = jax.random.normal(k_x, (2, in_f, 16, 16, 16), jnp.float32)

    model = Conv3dsepPallas(in_f, out_f, stride, padding, k_p)
    fwd = jax.jit(model)          # measure the whole jitted fn (glue + kernel)
    out = jax.block_until_ready(fwd(x))

    def ref_conv(xx, ww):
        return lax.conv_general_dilated(
            xx, ww,
            window_strides=(stride,) * 3,
            padding=[(padding, padding)] * 3,
            dimension_numbers=("NCDHW", "OIDHW", "NCDHW"),
            precision=lax.Precision.HIGHEST,
        ) + model.bias.reshape(1, out_f, 1, 1, 1)

    # Tight check against the bf16-quantized operands (same numbers the MXU
    # sees, f32 math) and a loose check against the full-f32 reference.
    x_q = x.astype(jnp.bfloat16).astype(jnp.float32)
    w_q = model.weight.astype(jnp.bfloat16).astype(jnp.float32)
    ref_q = ref_conv(x_q, w_q)
    ref_f32 = ref_conv(x, model.weight)

    assert out.shape == ref_f32.shape
    assert jnp.allclose(out, ref_q, atol=1e-3, rtol=1e-3), \
        "mismatch vs bf16-quantized reference"
    assert jnp.allclose(out, ref_f32, atol=1e-2, rtol=1e-2), \
        "mismatch vs f32 reference"
    print("KERNEL_OK")
</pallas_src>

<mosaic_0001>
module attributes {stable_mosaic.version = 11 : i64} {
  func.func @_conv3d_kernel(%arg0: i32, %arg1: memref<512x128xbf16, #tpu.memory_space<vmem>>, %arg2: memref<128x128xbf16, #tpu.memory_space<vmem>>, %arg3: memref<1x128xf32, #tpu.memory_space<vmem>>, %arg4: memref<512x128xf32, #tpu.memory_space<vmem>>) attributes {dimension_semantics = [#tpu.dimension_semantics<parallel>], iteration_bounds = array<i64: 16>, scalar_prefetch = 0 : i64, scratch_operands = 0 : i64, tpu.core_type = #tpu.core_type<tc>, window_params = [{transform_indices = @transform_0, window_bounds = array<i64: 512, 128>}, {pipeline_mode = #tpu.pipeline_mode<synchronous>, transform_indices = @transform_1, window_bounds = array<i64: 128, 128>}, {pipeline_mode = #tpu.pipeline_mode<synchronous>, transform_indices = @transform_2, window_bounds = array<i64: 1, 128>}, {transform_indices = @transform_3, window_bounds = array<i64: 512, 128>}]} {
    %c0 = arith.constant 0 : index
    %c0_0 = arith.constant 0 : index
    %0 = vector.load %arg1[%c0, %c0_0] : memref<512x128xbf16, #tpu.memory_space<vmem>>, vector<512x128xbf16>
    %c0_1 = arith.constant 0 : index
    %c0_2 = arith.constant 0 : index
    %1 = vector.load %arg2[%c0_1, %c0_2] : memref<128x128xbf16, #tpu.memory_space<vmem>>, vector<128x128xbf16>
    %cst = arith.constant dense<0.000000e+00> : vector<512x128xf32>
    %2 = tpu.matmul %0, %1, %cst {dimension_numbers = #tpu.dot_dimension_numbers<[1], [0], [0], [1], [0, 0, 1, 1], [], []>} : vector<512x128xbf16>, vector<128x128xbf16>, vector<512x128xf32> -> vector<512x128xf32>
    %c0_3 = arith.constant 0 : index
    %c0_4 = arith.constant 0 : index
    %3 = vector.load %arg3[%c0_3, %c0_4] : memref<1x128xf32, #tpu.memory_space<vmem>>, vector<1x128xf32>
    %4 = vector.broadcast %3 : vector<1x128xf32> to vector<512x128xf32>
    %5 = arith.addf %2, %4 : vector<512x128xf32>
    %c0_5 = arith.constant 0 : index
    %c0_6 = arith.constant 0 : index
    %6 = vector.load %arg4[%c0_5, %c0_6] : memref<512x128xf32, #tpu.memory_space<vmem>>, vector<512x128xf32>
    tpu.vector_store %arg4[%c0_5, %c0_6], %5 {strides = array<i32>} : memref<512x128xf32, #tpu.memory_space<vmem>>, vector<512x128xf32>,
    return
  }
  func.func @transform_0(%arg0: i32) -> (i32, i32) {
    %c0_i32 = arith.constant 0 : i32
    %c0_i32_0 = arith.constant 0 : i32
    return %arg0, %c0_i32 : i32, i32
  }
  func.func @transform_1(%arg0: i32) -> (i32, i32) {
    %c0_i32 = arith.constant 0 : i32
    %c0_i32_0 = arith.constant 0 : i32
    %c0_i32_1 = arith.constant 0 : i32
    return %c0_i32, %c0_i32_0 : i32, i32
  }
  func.func @transform_2(%arg0: i32) -> (i32, i32) {
    %c0_i32 = arith.constant 0 : i32
    %c0_i32_0 = arith.constant 0 : i32
    %c0_i32_1 = arith.constant 0 : i32
    return %c0_i32, %c0_i32_0 : i32, i32
  }
  func.func @transform_3(%arg0: i32) -> (i32, i32) {
    %c0_i32 = arith.constant 0 : i32
    %c0_i32_0 = arith.constant 0 : i32
    return %arg0, %c0_i32 : i32, i32
  }
}

</mosaic_0001>

<bundles_post_ra>
// kernel: _unnamed_function_.1
= control target key start
LH: loop header
LB: loop body
LE: loop exit
PB: predicated region body
PF: predicated region fallthrough
CT: control target
= control target key end

     0   :  { %s1175_s12 = smov 0   ;;  %s1389_s0 = inlined_call_operand.vmem [shape: bf16[8192,128], index: 0, kind: input, shape index: {}]   ;;  %s1390_s1 = inlined_call_operand.vmem [shape: bf16[128,128], index: 1, kind: input, shape index: {}]   ;;  %s1391_s2 = inlined_call_operand.vmem [shape: f32[1,128], index: 2, kind: input, shape index: {}]   ;;  %s1392_s3 = inlined_call_operand.vmem [shape: f32[8192,128], index: 3, kind: output, shape index: {}]  }
   0x1 LB: > { %s911_s13 = sadd.s32 4294967295, %s1153_s12   ;;  %p915_p0 = scmp.ge.s32.totalorder %s1153_s12, 1  ;;  %s1153_s12 = sphi %s1175_s12, %s13_s12  }
   0x2   : > { %p138_p1 = scmp.lt.s32.totalorder %s1153_s12, 17 }
   0x4   : > { %p139_p2 = pnand %p915_p0, %p138_p1 }
   0x5   : > { %s916_s16 = sshll.u32 (!%p139_p2), %s911_s13, 6 }
   0x6   : > { %142 = sbr.rel (%p139_p2) target bundleno = 302 (0x12e), region = 32  ;;  %p163_p3 = scmp.lt.s32.totalorder (!%p139_p2), %s916_s16, 1023 }
   0xb   : > { %v1107_v0 = vld [vmem:[%s1390_s1 + $0x38] sm:$0xff]   ;;  %v1108_v1 = vld [vmem:[%s1390_s1 + $0x30] sm:$0xff]   ;;  %s1394_s16 = smov (!%p163_p3, %s916_s16), 1023  ;;  %v1109_v2 = vld [vmem:[%s1390_s1 + $0x28] sm:$0xff]  }
   0xc   : > { %1003 = vmatprep.subr.bf16.mxu0 %v1107_v0  ;;  %1083 = vmatprep.subr.bf16.mxu1 %v1107_v0  ;;  %s917_s21 = sshll.u32 %s1394_s16, 2  ;;  %v1110_v3 = vld [vmem:[%s1390_s1 + $0x20] sm:$0xff]   ;;  %v1111_v6 = vld [vmem:[%s1390_s1 + $0x18] sm:$0xff]   ;;  %v1112_v7 = vld [vmem:[%s1390_s1 + $0x10] sm:$0xff]   ;;  %s919_s8 = sshll.u32 %s1394_s16, 3 }
   0xd   : > { %1004 = vmatpush3.bf16.msra.mxu0 %v1107_v0  ;;  %1091 = vmatpush3.bf16.msra.mxu1 %v1107_v0  ;;  %s1198_s24 = scalar_lea.vmem %s1389_s0, %s917_s21  ;;  %v1113_v8 = vld [vmem:[%s1390_s1 + $0x8] sm:$0xff]   ;;  %v1114_v9 = vld [vmem:[%s1390_s1] sm:$0xff]   ;;  %s1256_s14 = scalar_lea.vmem %s1392_s3, %s919_s8 }
   0xe   : > { %1005 = vmatprep.subr.bf16.mxu0 %v1108_v1  ;;  %1084 = vmatprep.subr.bf16.mxu1 %v1108_v1  ;;  %v1115_v4 = vld [vmem:[%s1198_s24] sm:$0xff]   ;;  %v1117_v10 = vld [vmem:[%s1198_s24 + $0x8] sm:$0xff]   ;;  %v1119_v12 = vld [vmem:[%s1198_s24 + $0x10] sm:$0xff]  }
   0xf   : > { %v1116_v5 = vld [vmem:[%s1198_s24 + $0x80] sm:$0xff]   ;;  %1019 = vmatprep.mubr.bf16.mxu0 %v1115_v4  ;;  %v1118_v11 = vld [vmem:[%s1198_s24 + $0x88] sm:$0xff]   ;;  %v1120_v13 = vld [vmem:[%s1198_s24 + $0x90] sm:$0xff]  }
  0x10   : > { %1051 = vmatprep.mubr.bf16.mxu1 %v1116_v5  ;;  %v1121_v14 = vld [vmem:[%s1198_s24 + $0x18] sm:$0xff]   ;;  %v1123_v16 = vld [vmem:[%s1198_s24 + $0x20] sm:$0xff]   ;;  %v1125_v18 = vld [vmem:[%s1198_s24 + $0x28] sm:$0xff]  }
  0x11   : > { %1006 = vmatpush3.bf16.msra.mxu0 %v1108_v1  ;;  %1092 = vmatpush3.bf16.msra.mxu1 %v1108_v1  ;;  %v1122_v15 = vld [vmem:[%s1198_s24 + $0x98] sm:$0xff]   ;;  %v1124_v17 = vld [vmem:[%s1198_s24 + $0xa0] sm:$0xff]   ;;  %v1126_v19 = vld [vmem:[%s1198_s24 + $0xa8] sm:$0xff]  }
  0x12   : > { %1007 = vmatprep.subr.bf16.mxu0 %v1109_v2  ;;  %1085 = vmatprep.subr.bf16.mxu1 %v1109_v2  ;;  %v1127_v20 = vld [vmem:[%s1198_s24 + $0x30] sm:$0xff]   ;;  %v1129_v22 = vld [vmem:[%s1198_s24 + $0x38] sm:$0xff]   ;;  %v1131_v24 = vld [vmem:[%s1198_s24 + $0x40] sm:$0xff]  }
  0x13   : > { %v1128_v21 = vld [vmem:[%s1198_s24 + $0xb0] sm:$0xff]   ;;  %v1130_v23 = vld [vmem:[%s1198_s24 + $0xb8] sm:$0xff]   ;;  %v1132_v25 = vld [vmem:[%s1198_s24 + $0xc0] sm:$0xff]  }
  0x14   : > { %v1133_v26 = vld [vmem:[%s1198_s24 + $0x48] sm:$0xff]   ;;  %v1135_v28 = vld [vmem:[%s1198_s24 + $0x50] sm:$0xff]   ;;  %v1137_v30 = vld [vmem:[%s1198_s24 + $0x58] sm:$0xff]  }
  0x15   : > { %1008 = vmatpush3.bf16.msra.mxu0 %v1109_v2  ;;  %1093 = vmatpush3.bf16.msra.mxu1 %v1109_v2  ;;  %v1134_v27 = vld [vmem:[%s1198_s24 + $0xc8] sm:$0xff]   ;;  %v1136_v29 = vld [vmem:[%s1198_s24 + $0xd0] sm:$0xff]   ;;  %v1138_v31 = vld [vmem:[%s1198_s24 + $0xd8] sm:$0xff]  }
  0x16   : > { %1009 = vmatprep.subr.bf16.mxu0 %v1110_v3  ;;  %1086 = vmatprep.subr.bf16.mxu1 %v1110_v3  ;;  %v1139_v32 = vld [vmem:[%s1198_s24 + $0x60] sm:$0xff]   ;;  %v1141_v34 = vld [vmem:[%s1198_s24 + $0x68] sm:$0xff]   ;;  %v1143_v36 = vld [vmem:[%s1198_s24 + $0x70] sm:$0xff]  }
  0x17   : > { %v1140_v33 = vld [vmem:[%s1198_s24 + $0xe0] sm:$0xff]   ;;  %v1142_v35 = vld [vmem:[%s1198_s24 + $0xe8] sm:$0xff]   ;;  %v1144_v37 = vld [vmem:[%s1198_s24 + $0xf0] sm:$0xff]  }
  0x18   : > { %v1145_v38 = vld [vmem:[%s1198_s24 + $0x78] sm:$0xff]   ;;  %v1251_v40 = vld [vmem:[%s1391_s2] ss:$0 sm:$0xff] }
  0x19   : > { %1010 = vmatpush3.bf16.msra.mxu0 %v1110_v3  ;;  %1094 = vmatpush3.bf16.msra.mxu1 %v1110_v3  ;;  %v1146_v39 = vld [vmem:[%s1198_s24 + $0xf8] sm:$0xff]  }
  0x1a   : > { %1011 = vmatprep.subr.bf16.mxu0 %v1111_v6  ;;  %1087 = vmatprep.subr.bf16.mxu1 %v1111_v6 }
  0x1d   : > { %1012 = vmatpush3.bf16.msra.mxu0 %v1111_v6  ;;  %1095 = vmatpush3.bf16.msra.mxu1 %v1111_v6 }
  0x1e   : > { %1013 = vmatprep.subr.bf16.mxu0 %v1112_v7  ;;  %1088 = vmatprep.subr.bf16.mxu1 %v1112_v7 }
  0x21   : > { %1014 = vmatpush3.bf16.msra.mxu0 %v1112_v7  ;;  %1096 = vmatpush3.bf16.msra.mxu1 %v1112_v7 }
  0x22   : > { %1015 = vmatprep.subr.bf16.mxu0 %v1113_v8  ;;  %1089 = vmatprep.subr.bf16.mxu1 %v1113_v8 }
  0x25   : > { %1016 = vmatpush3.bf16.msra.mxu0 %v1113_v8  ;;  %1097 = vmatpush3.bf16.msra.mxu1 %v1113_v8 }
  0x26   : > { %1017 = vmatprep.subr.bf16.mxu0 %v1114_v9  ;;  %1090 = vmatprep.subr.bf16.mxu1 %v1114_v9 }
  0x29   : > { %1018 = vmatpush3.bf16.msra.mxu0 %v1114_v9  ;;  %1098 = vmatpush3.bf16.msra.mxu1 %v1114_v9 }
  0x2c   : > { %1020 = vmatmul.mubr.bf16.vlgmr.msra.gmra.mxu0 %v1117_v10  ;;  %1052 = vmatmul.mubr.bf16.vlgmr.msra.gmra.mxu1 %v1118_v11 }
  0x2d   : > { %1023 = vmatprep.mubr.bf16.mxu0 %v1119_v12  ;;  %1055 = vmatprep.mubr.bf16.mxu1 %v1120_v13 }
  0x34   : > { %1024 = vmatmul.mubr.bf16.gmra.mxu0 %v1121_v14  ;;  %1056 = vmatmul.mubr.bf16.gmra.mxu1 %v1122_v15 }
  0x35   : > { %1027 = vmatprep.mubr.bf16.mxu0 %v1123_v16  ;;  %1059 = vmatprep.mubr.bf16.mxu1 %v1124_v17 }
  0x3c   : > { %1028 = vmatmul.mubr.bf16.gmra.mxu0 %v1125_v18  ;;  %1060 = vmatmul.mubr.bf16.gmra.mxu1 %v1126_v19 }
  0x3d   : > { %1031 = vmatprep.mubr.bf16.mxu0 %v1127_v20  ;;  %1063 = vmatprep.mubr.bf16.mxu1 %v1128_v21 }
  0x44   : > { %1032 = vmatmul.mubr.bf16.gmra.mxu0 %v1129_v22  ;;  %1064 = vmatmul.mubr.bf16.gmra.mxu1 %v1130_v23 }
  0x45   : > { %1035 = vmatprep.mubr.bf16.mxu0 %v1131_v24  ;;  %1067 = vmatprep.mubr.bf16.mxu1 %v1132_v25 }
  0x4c   : > { %1036 = vmatmul.mubr.bf16.gmra.mxu0 %v1133_v26  ;;  %1068 = vmatmul.mubr.bf16.gmra.mxu1 %v1134_v27 }
  0x4d   : > { %1039 = vmatprep.mubr.bf16.mxu0 %v1135_v28  ;;  %1071 = vmatprep.mubr.bf16.mxu1 %v1136_v29 }
  0x54   : > { %1040 = vmatmul.mubr.bf16.gmra.mxu0 %v1137_v30  ;;  %1072 = vmatmul.mubr.bf16.gmra.mxu1 %v1138_v31 }
  0x55   : > { %1043 = vmatprep.mubr.bf16.mxu0 %v1139_v32  ;;  %1075 = vmatprep.mubr.bf16.mxu1 %v1140_v33 }
  0x5c   : > { %1044 = vmatmul.mubr.bf16.gmra.mxu0 %v1141_v34  ;;  %1076 = vmatmul.mubr.bf16.gmra.mxu1 %v1142_v35 }
  0x5d   : > { %1047 = vmatprep.mubr.bf16.mxu0 %v1143_v36  ;;  %1079 = vmatprep.mubr.bf16.mxu1 %v1144_v37 }
  0x64   : > { %1048 = vmatmul.mubr.bf16.gmra.mxu0 %v1145_v38  ;;  %1080 = vmatmul.mubr.bf16.gmra.mxu1 %v1146_v39 }
  0xec   : > { %v1021_v41 = vpop.f32.mrf.mxu0  ;;  %v1053_v42 = vpop.f32.mrf.mxu1 }
  0xed   : > { %v545_v43 = vadd.f32 %v1021_v41, %v1251_v40  ;;  %v673_v44 = vadd.f32 %v1053_v42, %v1251_v40 }
  0xee   : > { %v536_v45 = vpop.f32.mrf.mxu0  ;;  %v664_v46 = vpop.f32.mrf.mxu1 }
  0xef   : > { %793 = vst [vmem:[%s1256_s14 + $0x10] sm:$0xff] %v545_v43  ;;  %825 = vst [vmem:[%s1256_s14 + $0x110] sm:$0xff] %v673_v44  ;;  %v537_v47 = vadd.f32 %v1251_v40, %v536_v45  ;;  %v665_v48 = vadd.f32 %v1251_v40, %v664_v46 }
  0xf0   : > { %v1022_v49 = vpop.f32.mrf.mxu0  ;;  %v1054_v50 = vpop.f32.mrf.mxu1 }
  0xf1   : > { %791 = vst [vmem:[%s1256_s14] sm:$0xff] %v537_v47  ;;  %823 = vst [vmem:[%s1256_s14 + $0x100] sm:$0xff] %v665_v48  ;;  %v548_v51 = vadd.f32 %v1022_v49, %v1251_v40  ;;  %v676_v52 = vadd.f32 %v1054_v50, %v1251_v40 }
  0xf2   : > { %v539_v53 = vpop.f32.mrf.mxu0  ;;  %v667_v54 = vpop.f32.mrf.mxu1 }
  0xf3   : > { %794 = vst [vmem:[%s1256_s14 + $0x18] sm:$0xff] %v548_v51  ;;  %826 = vst [vmem:[%s1256_s14 + $0x118] sm:$0xff] %v676_v52  ;;  %v540_v55 = vadd.f32 %v1251_v40, %v539_v53  ;;  %v668_v56 = vadd.f32 %v1251_v40, %v667_v54 }
  0xf4   : > { %v1025_v57 = vpop.f32.mrf.mxu0  ;;  %v1057_v58 = vpop.f32.mrf.mxu1 }
  0xf5   : > { %792 = vst [vmem:[%s1256_s14 + $0x8] sm:$0xff] %v540_v55  ;;  %824 = vst [vmem:[%s1256_s14 + $0x108] sm:$0xff] %v668_v56  ;;  %v561_v59 = vadd.f32 %v1025_v57, %v1251_v40  ;;  %v689_v60 = vadd.f32 %v1057_v58, %v1251_v40 }
  0xf6   : > { %v552_v61 = vpop.f32.mrf.mxu0  ;;  %v680_v62 = vpop.f32.mrf.mxu1 }
  0xf7   : > { %797 = vst [vmem:[%s1256_s14 + $0x30] sm:$0xff] %v561_v59  ;;  %829 = vst [vmem:[%s1256_s14 + $0x130] sm:$0xff] %v689_v60  ;;  %v553_v63 = vadd.f32 %v1251_v40, %v552_v61  ;;  %v681_v0 = vadd.f32 %v1251_v40, %v680_v62 }
  0xf8   : > { %v1026_v1 = vpop.f32.mrf.mxu0  ;;  %v1058_v2 = vpop.f32.mrf.mxu1 }
  0xf9   : > { %795 = vst [vmem:[%s1256_s14 + $0x20] sm:$0xff] %v553_v63  ;;  %827 = vst [vmem:[%s1256_s14 + $0x120] sm:$0xff] %v681_v0  ;;  %v564_v3 = vadd.f32 %v1026_v1, %v1251_v40  ;;  %v692_v4 = vadd.f32 %v1058_v2, %v1251_v40 }
  0xfa   : > { %v555_v5 = vpop.f32.mrf.mxu0  ;;  %v683_v6 = vpop.f32.mrf.mxu1 }
  0xfb   : > { %798 = vst [vmem:[%s1256_s14 + $0x38] sm:$0xff] %v564_v3  ;;  %830 = vst [vmem:[%s1256_s14 + $0x138] sm:$0xff] %v692_v4  ;;  %v556_v7 = vadd.f32 %v1251_v40, %v555_v5  ;;  %v684_v8 = vadd.f32 %v1251_v40, %v683_v6 }
  0xfc   : > { %v1029_v9 = vpop.f32.mrf.mxu0  ;;  %v1061_v10 = vpop.f32.mrf.mxu1 }
  0xfd   : > { %796 = vst [vmem:[%s1256_s14 + $0x28] sm:$0xff] %v556_v7  ;;  %828 = vst [vmem:[%s1256_s14 + $0x128] sm:$0xff] %v684_v8  ;;  %v577_v11 = vadd.f32 %v1029_v9, %v1251_v40  ;;  %v705_v12 = vadd.f32 %v1061_v10, %v1251_v40 }
  0xfe   : > { %v568_v13 = vpop.f32.mrf.mxu0  ;;  %v696_v14 = vpop.f32.mrf.mxu1 }
  0xff   : > { %801 = vst [vmem:[%s1256_s14 + $0x50] sm:$0xff] %v577_v11  ;;  %833 = vst [vmem:[%s1256_s14 + $0x150] sm:$0xff] %v705_v12  ;;  %v569_v15 = vadd.f32 %v1251_v40, %v568_v13  ;;  %v697_v16 = vadd.f32 %v1251_v40, %v696_v14 }
 0x100   : > { %v1030_v17 = vpop.f32.mrf.mxu0  ;;  %v1062_v18 = vpop.f32.mrf.mxu1 }
 0x101   : > { %799 = vst [vmem:[%s1256_s14 + $0x40] sm:$0xff] %v569_v15  ;;  %831 = vst [vmem:[%s1256_s14 + $0x140] sm:$0xff] %v697_v16  ;;  %v580_v19 = vadd.f32 %v1030_v17, %v1251_v40  ;;  %v708_v20 = vadd.f32 %v1062_v18, %v1251_v40 }
 0x102   : > { %v571_v21 = vpop.f32.mrf.mxu0  ;;  %v699_v22 = vpop.f32.mrf.mxu1 }
 0x103   : > { %802 = vst [vmem:[%s1256_s14 + $0x58] sm:$0xff] %v580_v19  ;;  %834 = vst [vmem:[%s1256_s14 + $0x158] sm:$0xff] %v708_v20  ;;  %v572_v23 = vadd.f32 %v1251_v40, %v571_v21  ;;  %v700_v24 = vadd.f32 %v1251_v40, %v699_v22 }
 0x104   : > { %v1033_v25 = vpop.f32.mrf.mxu0  ;;  %v1065_v26 = vpop.f32.mrf.mxu1 }
 0x105   : > { %800 = vst [vmem:[%s1256_s14 + $0x48] sm:$0xff] %v572_v23  ;;  %832 = vst [vmem:[%s1256_s14 + $0x148] sm:$0xff] %v700_v24  ;;  %v593_v27 = vadd.f32 %v1033_v25, %v1251_v40  ;;  %v721_v28 = vadd.f32 %v1065_v26, %v1251_v40 }
 0x106   : > { %v584_v29 = vpop.f32.mrf.mxu0  ;;  %v712_v30 = vpop.f32.mrf.mxu1 }
 0x107   : > { %805 = vst [vmem:[%s1256_s14 + $0x70] sm:$0xff] %v593_v27  ;;  %837 = vst [vmem:[%s1256_s14 + $0x170] sm:$0xff] %v721_v28  ;;  %v585_v31 = vadd.f32 %v1251_v40, %v584_v29  ;;  %v713_v32 = vadd.f32 %v1251_v40, %v712_v30 }
 0x108   : > { %v1034_v33 = vpop.f32.mrf.mxu0  ;;  %v1066_v34 = vpop.f32.mrf.mxu1 }
 0x109   : > { %803 = vst [vmem:[%s1256_s14 + $0x60] sm:$0xff] %v585_v31  ;;  %835 = vst [vmem:[%s1256_s14 + $0x160] sm:$0xff] %v713_v32  ;;  %v596_v35 = vadd.f32 %v1034_v33, %v1251_v40  ;;  %v724_v36 = vadd.f32 %v1066_v34, %v1251_v40 }
 0x10a   : > { %v587_v37 = vpop.f32.mrf.mxu0  ;;  %v715_v38 = vpop.f32.mrf.mxu1 }
 0x10b   : > { %806 = vst [vmem:[%s1256_s14 + $0x78] sm:$0xff] %v596_v35  ;;  %838 = vst [vmem:[%s1256_s14 + $0x178] sm:$0xff] %v724_v36  ;;  %v588_v39 = vadd.f32 %v1251_v40, %v587_v37  ;;  %v716_v41 = vadd.f32 %v1251_v40, %v715_v38 }
 0x10c   : > { %v1037_v42 = vpop.f32.mrf.mxu0  ;;  %v1069_v43 = vpop.f32.mrf.mxu1 }
 0x10d   : > { %804 = vst [vmem:[%s1256_s14 + $0x68] sm:$0xff] %v588_v39  ;;  %836 = vst [vmem:[%s1256_s14 + $0x168] sm:$0xff] %v716_v41  ;;  %v609_v44 = vadd.f32 %v1037_v42, %v1251_v40  ;;  %v737_v45 = vadd.f32 %v1069_v43, %v1251_v40 }
 0x10e   : > { %v600_v46 = vpop.f32.mrf.mxu0  ;;  %v728_v47 = vpop.f32.mrf.mxu1 }
 0x10f   : > { %809 = vst [vmem:[%s1256_s14 + $0x90] sm:$0xff] %v609_v44  ;;  %841 = vst [vmem:[%s1256_s14 + $0x190] sm:$0xff] %v737_v45  ;;  %v601_v48 = vadd.f32 %v1251_v40, %v600_v46  ;;  %v729_v49 = vadd.f32 %v1251_v40, %v728_v47 }
 0x110   : > { %v1038_v50 = vpop.f32.mrf.mxu0  ;;  %v1070_v51 = vpop.f32.mrf.mxu1 }
 0x111   : > { %807 = vst [vmem:[%s1256_s14 + $0x80] sm:$0xff] %v601_v48  ;;  %839 = vst [vmem:[%s1256_s14 + $0x180] sm:$0xff] %v729_v49  ;;  %v612_v52 = vadd.f32 %v1038_v50, %v1251_v40  ;;  %v740_v53 = vadd.f32 %v1070_v51, %v1251_v40 }
 0x112   : > { %v603_v54 = vpop.f32.mrf.mxu0  ;;  %v731_v55 = vpop.f32.mrf.mxu1 }
 0x113   : > { %810 = vst [vmem:[%s1256_s14 + $0x98] sm:$0xff] %v612_v52  ;;  %842 = vst [vmem:[%s1256_s14 + $0x198] sm:$0xff] %v740_v53  ;;  %v604_v56 = vadd.f32 %v1251_v40, %v603_v54  ;;  %v732_v57 = vadd.f32 %v1251_v40, %v731_v55 }
 0x114   : > { %v1041_v58 = vpop.f32.mrf.mxu0  ;;  %v1073_v59 = vpop.f32.mrf.mxu1 }
 0x115   : > { %808 = vst [vmem:[%s1256_s14 + $0x88] sm:$0xff] %v604_v56  ;;  %840 = vst [vmem:[%s1256_s14 + $0x188] sm:$0xff] %v732_v57  ;;  %v625_v60 = vadd.f32 %v1041_v58, %v1251_v40  ;;  %v753_v61 = vadd.f32 %v1073_v59, %v1251_v40 }
 0x116   : > { %v616_v62 = vpop.f32.mrf.mxu0  ;;  %v744_v63 = vpop.f32.mrf.mxu1 }
 0x117   : > { %813 = vst [vmem:[%s1256_s14 + $0xb0] sm:$0xff] %v625_v60  ;;  %845 = vst [vmem:[%s1256_s14 + $0x1b0] sm:$0xff] %v753_v61  ;;  %v617_v0 = vadd.f32 %v1251_v40, %v616_v62  ;;  %v745_v1 = vadd.f32 %v1251_v40, %v744_v63 }
 0x118   : > { %v1042_v2 = vpop.f32.mrf.mxu0  ;;  %v1074_v3 = vpop.f32.mrf.mxu1 }
 0x119   : > { %811 = vst [vmem:[%s1256_s14 + $0xa0] sm:$0xff] %v617_v0  ;;  %843 = vst [vmem:[%s1256_s14 + $0x1a0] sm:$0xff] %v745_v1  ;;  %v628_v4 = vadd.f32 %v1042_v2, %v1251_v40  ;;  %v756_v5 = vadd.f32 %v1074_v3, %v1251_v40 }
 0x11a   : > { %v619_v6 = vpop.f32.mrf.mxu0  ;;  %v747_v7 = vpop.f32.mrf.mxu1 }
 0x11b   : > { %814 = vst [vmem:[%s1256_s14 + $0xb8] sm:$0xff] %v628_v4  ;;  %846 = vst [vmem:[%s1256_s14 + $0x1b8] sm:$0xff] %v756_v5  ;;  %v620_v8 = vadd.f32 %v1251_v40, %v619_v6  ;;  %v748_v9 = vadd.f32 %v1251_v40, %v747_v7 }
 0x11c   : > { %v1045_v10 = vpop.f32.mrf.mxu0  ;;  %v1077_v11 = vpop.f32.mrf.mxu1 }
 0x11d   : > { %812 = vst [vmem:[%s1256_s14 + $0xa8] sm:$0xff] %v620_v8  ;;  %844 = vst [vmem:[%s1256_s14 + $0x1a8] sm:$0xff] %v748_v9  ;;  %v641_v12 = vadd.f32 %v1045_v10, %v1251_v40  ;;  %v769_v13 = vadd.f32 %v1077_v11, %v1251_v40 }
 0x11e   : > { %v632_v14 = vpop.f32.mrf.mxu0  ;;  %v760_v15 = vpop.f32.mrf.mxu1 }
 0x11f   : > { %817 = vst [vmem:[%s1256_s14 + $0xd0] sm:$0xff] %v641_v12  ;;  %849 = vst [vmem:[%s1256_s14 + $0x1d0] sm:$0xff] %v769_v13  ;;  %v633_v16 = vadd.f32 %v1251_v40, %v632_v14  ;;  %v761_v17 = vadd.f32 %v1251_v40, %v760_v15 }
 0x120   : > { %v1046_v18 = vpop.f32.mrf.mxu0  ;;  %v1078_v19 = vpop.f32.mrf.mxu1 }
 0x121   : > { %815 = vst [vmem:[%s1256_s14 + $0xc0] sm:$0xff] %v633_v16  ;;  %847 = vst [vmem:[%s1256_s14 + $0x1c0] sm:$0xff] %v761_v17  ;;  %v644_v20 = vadd.f32 %v1046_v18, %v1251_v40  ;;  %v772_v21 = vadd.f32 %v1078_v19, %v1251_v40 }
 0x122   : > { %v635_v22 = vpop.f32.mrf.mxu0  ;;  %v763_v23 = vpop.f32.mrf.mxu1 }
 0x123   : > { %818 = vst [vmem:[%s1256_s14 + $0xd8] sm:$0xff] %v644_v20  ;;  %850 = vst [vmem:[%s1256_s14 + $0x1d8] sm:$0xff] %v772_v21  ;;  %v636_v24 = vadd.f32 %v1251_v40, %v635_v22  ;;  %v764_v25 = vadd.f32 %v1251_v40, %v763_v23 }
 0x124   : > { %v1049_v26 = vpop.f32.mrf.mxu0  ;;  %v1081_v27 = vpop.f32.mrf.mxu1 }
 0x125   : > { %816 = vst [vmem:[%s1256_s14 + $0xc8] sm:$0xff] %v636_v24  ;;  %848 = vst [vmem:[%s1256_s14 + $0x1c8] sm:$0xff] %v764_v25  ;;  %v657_v28 = vadd.f32 %v1049_v26, %v1251_v40  ;;  %v785_v29 = vadd.f32 %v1081_v27, %v1251_v40 }
 0x126   : > { %v648_v30 = vpop.f32.mrf.mxu0  ;;  %v776_v31 = vpop.f32.mrf.mxu1 }
 0x127   : > { %821 = vst [vmem:[%s1256_s14 + $0xf0] sm:$0xff] %v657_v28  ;;  %853 = vst [vmem:[%s1256_s14 + $0x1f0] sm:$0xff] %v785_v29  ;;  %v649_v32 = vadd.f32 %v1251_v40, %v648_v30  ;;  %v777_v33 = vadd.f32 %v1251_v40, %v776_v31 }
 0x128   : > { %v1050_v34 = vpop.f32.mrf.mxu0  ;;  %v1082_v35 = vpop.f32.mrf.mxu1 }
 0x129   : > { %819 = vst [vmem:[%s1256_s14 + $0xe0] sm:$0xff] %v649_v32  ;;  %851 = vst [vmem:[%s1256_s14 + $0x1e0] sm:$0xff] %v777_v33  ;;  %v660_v36 = vadd.f32 %v1050_v34, %v1251_v40  ;;  %v788_v37 = vadd.f32 %v1082_v35, %v1251_v40 }
 0x12a   : > { %v651_v38 = vpop.f32.mrf.mxu0  ;;  %v779_v39 = vpop.f32.mrf.mxu1 }
 0x12b   : > { %822 = vst [vmem:[%s1256_s14 + $0xf8] sm:$0xff] %v660_v36  ;;  %854 = vst [vmem:[%s1256_s14 + $0x1f8] sm:$0xff] %v788_v37  ;;  %v652_v41 = vadd.f32 %v1251_v40, %v651_v38  ;;  %v780_v42 = vadd.f32 %v1251_v40, %v779_v39 }
 0x12d   : > { %820 = vst [vmem:[%s1256_s14 + $0xe8] sm:$0xff] %v652_v41  ;;  %852 = vst [vmem:[%s1256_s14 + $0x1e8] sm:$0xff] %v780_v42 }
 0x12e PF: > { %s13_s12 = sadd.s32 1, %s1153_s12  }
 0x12f   : > { %p10_p4 = scmp.ge.s32.totalorder %s13_s12, 18  }
 0x131   :  { %12 = sbr.rel (!%p10_p4) target bundleno = 1 (0x1), region = 62 }

</bundles_post_ra>
